<compile_context>
chip_gen: v6e
topology: v6e:2x2x1
jax: 0.10.0
libtpu: 0.0.40
codegen_flags: <defaults>
</compile_context>

<pallas_src>
import jax
import jax.numpy as jnp
from jax import lax
from jax.experimental import pallas as pl
from jax.experimental.pallas import tpu as pltpu

INNER_SIZE = 32

_LANE = 128
_SUBLANE = 8
_TARGET_STEP_BYTES = 4 << 20      # aim for >= ~4 MiB of x DMA per grid step
_MIN_STEP_BYTES = 512 << 10       # never split below ~512 KiB per step
_VMEM_WORKSET_BYTES = 20 << 20    # pipelined working-set budget (v7x-safe)


def _round_up(n, m):
    return ((n + m - 1) // m) * m


def _clip_classifier_kernel(x_ref, w1_ref, b1_ref, w2_ref, b2_ref,
                            w3_ref, b3_ref, o_ref):
    # x_ref: (block_b, D) -- normalization already folded into w1/b1.
    x = x_ref[...]

    # Linear 1 + ReLU (MXU matmul, f32 accumulate; x/w1 may be bf16).
    h1 = jnp.dot(x, w1_ref[...], preferred_element_type=jnp.float32) + b1_ref[...]
    h1 = jnp.maximum(h1, 0.0)

    # Linear 2 + ReLU.
    h2 = jnp.dot(h1, w2_ref[...], preferred_element_type=jnp.float32) + b2_ref[...]
    h2 = jnp.maximum(h2, 0.0)

    # Linear 3 + sigmoid, emitted lane-dense: contract the lane (=32) axes of
    # w3 (8, 32) [row 0 holds the real weights, rows 1..7 are zero padding]
    # with h2 (block_b, 32) -> (8, block_b); keep row 0 -> (1, block_b).
    z8 = lax.dot_general(
        w3_ref[...], h2,
        dimension_numbers=(((1,), (1,)), ((), ())),
        preferred_element_type=jnp.float32,
    )
    z = z8[0:1, :] + b3_ref[...]           # (1, block_b) + (1, 1) broadcast
    o_ref[...] = jax.nn.sigmoid(z).astype(o_ref.dtype)


def _choose_block_b(B, D, itemsize):
    """Bytes-based tile selection (multiple of 128, VMEM-safe on all gens)."""
    d_lanes = _round_up(max(D, _LANE), _LANE)
    row_dma_bytes = D * itemsize
    # Per-row pipelined VMEM footprint: double-buffered x tile + lane-padded
    # f32 intermediates (h1/h2 + one slack copy) + lane-dense out double buf.
    row_vmem_bytes = 2 * d_lanes * itemsize + 3 * _LANE * 4 + 2 * 4

    target_rows = pl.cdiv(_TARGET_STEP_BYTES, row_dma_bytes)
    vmem_rows = max(_LANE, _VMEM_WORKSET_BYTES // row_vmem_bytes)
    block_b = min(max(target_rows, _LANE), vmem_rows)
    block_b = max(_LANE, (block_b // _LANE) * _LANE)

    b_cap = _round_up(B, _LANE)
    block_b = min(block_b, b_cap)
    # Prefer >= 2 (ideally 4) grid steps so the "parallel" batch axis shards
    # across v7x's two TensorCores and pipelining has work to overlap, as
    # long as each halved step still moves a meaningful number of bytes.
    while (pl.cdiv(b_cap, block_b) < 4
           and block_b % (2 * _LANE) == 0
           and (block_b // 2) * row_dma_bytes >= _MIN_STEP_BYTES):
        block_b //= 2
    return block_b


def _estimate_vmem_limit(block_b, D, itemsize):
    d_lanes = _round_up(max(D, _LANE), _LANE)
    d_sub = _round_up(D, 16 if itemsize == 2 else _SUBLANE)
    est = (2 * block_b * d_lanes * itemsize            # x double buffer
           + block_b * 3 * _LANE * 4                   # h1/h2/slack (lane-padded)
           + 2 * _SUBLANE * block_b * 4                # lane-dense out double buf
           + 2 * (d_sub * _LANE * itemsize             # w1 (assume 2 buffers)
                  + 6 * _SUBLANE * _LANE * 4))         # small params
    return int(min(48 << 20, max(est + (8 << 20), 16 << 20)))


def _run_pallas(x_pad, w1, b1, w2, b2, w3_pad, b3, *,
                block_b, num_blocks, D, vmem_limit, single_buffer_weights):
    rep = lambda i: (0, 0)
    pkw = {}
    if single_buffer_weights and hasattr(pl, "Buffered"):
        # Constant index maps -> never re-DMA'd; a single buffer saves VMEM.
        pkw = dict(pipeline_mode=pl.Buffered(1))

    return pl.pallas_call(
        _clip_classifier_kernel,
        out_shape=jax.ShapeDtypeStruct((num_blocks, 1, block_b), jnp.float32),
        grid=(num_blocks,),
        in_specs=[
            pl.BlockSpec((block_b, D), lambda i: (i, 0)),          # x
            pl.BlockSpec((D, INNER_SIZE), rep, **pkw),             # w1 (folded)
            pl.BlockSpec((1, INNER_SIZE), rep, **pkw),             # b1 (folded)
            pl.BlockSpec((INNER_SIZE, INNER_SIZE), rep, **pkw),    # w2
            pl.BlockSpec((1, INNER_SIZE), rep, **pkw),             # b2
            pl.BlockSpec((8, INNER_SIZE), rep, **pkw),             # w3 (padded row)
            pl.BlockSpec((1, 1), rep, **pkw),                      # b3
        ],
        # Lane-dense output: leading (grid) dim squeezed, batch on lane axis.
        out_specs=pl.BlockSpec((None, 1, block_b), lambda i: (i, 0, 0)),
        compiler_params=pltpu.CompilerParams(
            dimension_semantics=("parallel",),
            vmem_limit_bytes=vmem_limit,
        ),
    )(x_pad, w1, b1, w2, b2, w3_pad, b3)


def ported_clip_classifier(x, params, *, block_b=None,
                           compute_dtype=jnp.bfloat16):
    """x: (B, D) float32.  params: dict of buffers/weights (see init_params).

    compute_dtype: dtype for the dominant x / folded-w1 streams (bfloat16
    halves HBM traffic; float32 gives the bit-exact path)."""
    B, D = x.shape
    itemsize = jnp.dtype(compute_dtype).itemsize

    # ---- fold the affine preprocessing into linear_1 (algebraically exact;
    # note: very small std entries would amplify w1' and widen rounding error).
    scale = params["category_mapper"] / params["std"]             # (1, D)
    shift = params["mean"] / params["std"]                        # (1, D)
    w1 = (params["w1"] * scale.reshape(D, 1)).astype(compute_dtype)   # (D, 32)
    b1 = params["b1"] - shift @ params["w1"]                      # (1, 32) f32
    w2, b2 = params["w2"], params["b2"]                           # (32,32),(1,32)
    w3_row = params["w3"].reshape(1, INNER_SIZE)                  # (1, 32)
    w3_pad = jnp.zeros((8, INNER_SIZE), jnp.float32).at[0:1, :].set(w3_row)
    b3 = params["b3"].reshape(1, 1)                               # (1, 1)

    # ---- batch tile selection ----
    if block_b is None:
        block_b = _choose_block_b(B, D, itemsize)
    else:
        block_b = max(_SUBLANE, _round_up(int(block_b), _SUBLANE))

    num_blocks = pl.cdiv(B, block_b)
    b_pad = num_blocks * block_b
    vmem_limit = _estimate_vmem_limit(block_b, D, itemsize)

    # Dominant stream in compute_dtype (bf16 by default; cast ideally fuses
    # into the producer in a real pipeline).  Zero-pad ragged batches.
    x_c = x.astype(compute_dtype)
    if b_pad != B:
        x_c = jnp.pad(x_c, ((0, b_pad - B), (0, 0)))

    try:
        out3d = _run_pallas(x_c, w1, b1, w2, b2, w3_pad, b3,
                            block_b=block_b, num_blocks=num_blocks, D=D,
                            vmem_limit=vmem_limit, single_buffer_weights=True)
    except Exception:
        # Fallback for JAX versions without BlockSpec(pipeline_mode=Buffered(1)):
        # identical math, default double-buffered parameters.
        out3d = _run_pallas(x_c, w1, b1, w2, b2, w3_pad, b3,
                            block_b=block_b, num_blocks=num_blocks, D=D,
                            vmem_limit=vmem_limit, single_buffer_weights=False)

    return out3d.reshape(b_pad, 1)[:B]


def init_params(input_size, key):
    """Deterministic synthetic parameters matching the module's shapes."""
    ks = jax.random.split(key, 8)
    return {
        # buffers
        "category_mapper": jnp.ones((1, input_size), jnp.float32),
        "mean": jax.random.normal(ks[0], (1, input_size), jnp.float32) * 0.1,
        "std": jnp.abs(jax.random.normal(ks[1], (1, input_size), jnp.float32)) + 0.5,
        # linear_1: nn.Linear(input_size, 32) -> stored transposed as (D, 32)
        "w1": jax.random.normal(ks[2], (input_size, INNER_SIZE), jnp.float32)
        * (1.0 / jnp.sqrt(input_size)),
        "b1": jax.random.normal(ks[3], (1, INNER_SIZE), jnp.float32) * 0.01,
        # linear_2: nn.Linear(32, 32)
        "w2": jax.random.normal(ks[4], (INNER_SIZE, INNER_SIZE), jnp.float32)
        * (1.0 / jnp.sqrt(INNER_SIZE)),
        "b2": jax.random.normal(ks[5], (1, INNER_SIZE), jnp.float32) * 0.01,
        # linear_3: nn.Linear(32, 1)
        "w3": jax.random.normal(ks[6], (INNER_SIZE, 1), jnp.float32)
        * (1.0 / jnp.sqrt(INNER_SIZE)),
        "b3": jax.random.normal(ks[7], (1, 1), jnp.float32) * 0.01,
    }


def reference_forward(x, p):
    """Pure-JAX reference mirroring the PyTorch forward exactly (un-folded)."""
    x = x * p["category_mapper"]
    x = (x - p["mean"]) / p["std"]
    x = jnp.maximum(x @ p["w1"] + p["b1"], 0.0)
    x = jnp.maximum(x @ p["w2"] + p["b2"], 0.0)
    x = x @ p["w3"] + p["b3"]
    return jax.nn.sigmoid(x)


if __name__ == "__main__":
    key = jax.random.PRNGKey(0)
    k_x, k_x2, k_p = jax.random.split(key, 3)

    # Small shapes consistent with the module (batch, embedding dim).
    B, D = 64, 64
    x = jax.random.normal(k_x, (B, D), jnp.float32)
    params = init_params(D, k_p)
    ref = reference_forward(x, params)

    # 1) Exact f32 path (tight tolerance).
    out_f32 = jax.block_until_ready(
        ported_clip_classifier(x, params, compute_dtype=jnp.float32))
    assert out_f32.shape == (B, 1), out_f32.shape
    assert jnp.allclose(out_f32, ref, atol=1e-5, rtol=1e-5), (
        f"f32 mismatch: max abs err {jnp.max(jnp.abs(out_f32 - ref))}"
    )

    # 2) Default bf16-stream path (halves HBM traffic; looser tolerance).
    out_bf = jax.block_until_ready(ported_clip_classifier(x, params))
    assert out_bf.shape == (B, 1), out_bf.shape
    assert jnp.allclose(out_bf, ref, atol=2e-2, rtol=0.0), (
        f"bf16 mismatch: max abs err {jnp.max(jnp.abs(out_bf - ref))}"
    )

    # 3) Ragged batch + explicit tile -> padding path + multi-step grid.
    B2 = 200
    x2 = jax.random.normal(k_x2, (B2, D), jnp.float32)
    ref2 = reference_forward(x2, params)
    out2 = jax.block_until_ready(
        ported_clip_classifier(x2, params, block_b=128))
    assert out2.shape == (B2, 1), out2.shape
    assert jnp.allclose(out2, ref2, atol=2e-2, rtol=0.0), (
        f"ragged mismatch: max abs err {jnp.max(jnp.abs(out2 - ref2))}"
    )

    print("KERNEL_OK")
</pallas_src>

<mosaic_0001>
module attributes {stable_mosaic.version = 11 : i64} {
  func.func @_clip_classifier_kernel(%arg0: i32, %arg1: memref<128x64xf32, #tpu.memory_space<vmem>>, %arg2: memref<64x32xf32, #tpu.memory_space<vmem>>, %arg3: memref<1x32xf32, #tpu.memory_space<vmem>>, %arg4: memref<32x32xf32, #tpu.memory_space<vmem>>, %arg5: memref<1x32xf32, #tpu.memory_space<vmem>>, %arg6: memref<8x32xf32, #tpu.memory_space<vmem>>, %arg7: memref<1x1xf32, #tpu.memory_space<vmem>>, %arg8: memref<1x1x128xf32, #tpu.memory_space<vmem>>) attributes {dimension_semantics = [#tpu.dimension_semantics<parallel>], iteration_bounds = array<i64: 1>, scalar_prefetch = 0 : i64, scratch_operands = 0 : i64, tpu.core_type = #tpu.core_type<tc>, window_params = [{transform_indices = @transform_0, window_bounds = array<i64: 128, 64>}, {pipeline_mode = #tpu.pipeline_mode<synchronous>, transform_indices = @transform_1, window_bounds = array<i64: 64, 32>}, {pipeline_mode = #tpu.pipeline_mode<synchronous>, transform_indices = @transform_2, window_bounds = array<i64: 1, 32>}, {pipeline_mode = #tpu.pipeline_mode<synchronous>, transform_indices = @transform_3, window_bounds = array<i64: 32, 32>}, {pipeline_mode = #tpu.pipeline_mode<synchronous>, transform_indices = @transform_4, window_bounds = array<i64: 1, 32>}, {pipeline_mode = #tpu.pipeline_mode<synchronous>, transform_indices = @transform_5, window_bounds = array<i64: 8, 32>}, {pipeline_mode = #tpu.pipeline_mode<synchronous>, transform_indices = @transform_6, window_bounds = array<i64: 1, 1>}, {transform_indices = @transform_7, window_bounds = array<i64: 1, 1, 128>}]} {
    %c0 = arith.constant 0 : index
    %c0_0 = arith.constant 0 : index
    %0 = vector.load %arg1[%c0, %c0_0] : memref<128x64xf32, #tpu.memory_space<vmem>>, vector<128x64xf32>
    %c0_1 = arith.constant 0 : index
    %c0_2 = arith.constant 0 : index
    %1 = vector.load %arg2[%c0_1, %c0_2] : memref<64x32xf32, #tpu.memory_space<vmem>>, vector<64x32xf32>
    %cst = arith.constant dense<0.000000e+00> : vector<128x32xf32>
    %2 = tpu.matmul %0, %1, %cst {dimension_numbers = #tpu.dot_dimension_numbers<[1], [0], [0], [1], [0, 0, 1, 1], [], []>} : vector<128x64xf32>, vector<64x32xf32>, vector<128x32xf32> -> vector<128x32xf32>
    %c0_3 = arith.constant 0 : index
    %c0_4 = arith.constant 0 : index
    %3 = vector.load %arg3[%c0_3, %c0_4] : memref<1x32xf32, #tpu.memory_space<vmem>>, vector<1x32xf32>
    %4 = vector.broadcast %3 : vector<1x32xf32> to vector<128x32xf32>
    %5 = arith.addf %2, %4 : vector<128x32xf32>
    %cst_5 = arith.constant 0.000000e+00 : f32
    %6 = vector.broadcast %cst_5 : f32 to vector<128x32xf32>
    %7 = arith.maximumf %5, %6 : vector<128x32xf32>
    %c0_6 = arith.constant 0 : index
    %c0_7 = arith.constant 0 : index
    %8 = vector.load %arg4[%c0_6, %c0_7] : memref<32x32xf32, #tpu.memory_space<vmem>>, vector<32x32xf32>
    %cst_8 = arith.constant dense<0.000000e+00> : vector<128x32xf32>
    %9 = tpu.matmul %7, %8, %cst_8 {dimension_numbers = #tpu.dot_dimension_numbers<[1], [0], [0], [1], [0, 0, 1, 1], [], []>} : vector<128x32xf32>, vector<32x32xf32>, vector<128x32xf32> -> vector<128x32xf32>
    %c0_9 = arith.constant 0 : index
    %c0_10 = arith.constant 0 : index
    %10 = vector.load %arg5[%c0_9, %c0_10] : memref<1x32xf32, #tpu.memory_space<vmem>>, vector<1x32xf32>
    %11 = vector.broadcast %10 : vector<1x32xf32> to vector<128x32xf32>
    %12 = arith.addf %9, %11 : vector<128x32xf32>
    %cst_11 = arith.constant 0.000000e+00 : f32
    %13 = vector.broadcast %cst_11 : f32 to vector<128x32xf32>
    %14 = arith.maximumf %12, %13 : vector<128x32xf32>
    %c0_12 = arith.constant 0 : index
    %c0_13 = arith.constant 0 : index
    %15 = vector.load %arg6[%c0_12, %c0_13] : memref<8x32xf32, #tpu.memory_space<vmem>>, vector<8x32xf32>
    %cst_14 = arith.constant dense<0.000000e+00> : vector<8x128xf32>
    %16 = tpu.matmul %15, %14, %cst_14 {dimension_numbers = #tpu.dot_dimension_numbers<[1], [1], [0], [0], [0, 0, 1, 0], [], []>} : vector<8x32xf32>, vector<128x32xf32>, vector<8x128xf32> -> vector<8x128xf32>
    %17 = vector.extract_strided_slice %16 {offsets = [0, 0], sizes = [1, 128], strides = [1, 1]} : vector<8x128xf32> to vector<1x128xf32>
    %c0_15 = arith.constant 0 : index
    %c0_16 = arith.constant 0 : index
    %18 = vector.load %arg7[%c0_15, %c0_16] : memref<1x1xf32, #tpu.memory_space<vmem>>, vector<1x1xf32>
    %19 = vector.broadcast %18 : vector<1x1xf32> to vector<1x128xf32>
    %20 = arith.addf %17, %19 : vector<1x128xf32>
    %21 = arith.negf %20 : vector<1x128xf32>
    %22 = math.exp %21 : vector<1x128xf32>
    %cst_17 = arith.constant 1.000000e+00 : f32
    %23 = vector.broadcast %cst_17 : f32 to vector<1x128xf32>
    %24 = arith.addf %23, %22 : vector<1x128xf32>
    %25 = arith.divf %23, %24 : vector<1x128xf32>
    %c0_18 = arith.constant 0 : index
    %c0_19 = arith.constant 0 : index
    %c0_20 = arith.constant 0 : index
    %26 = vector.load %arg8[%c0_18, %c0_19, %c0_20] : memref<1x1x128xf32, #tpu.memory_space<vmem>>, vector<1x1x128xf32>
    %27 = vector.shape_cast %26 : vector<1x1x128xf32> to vector<1x128xf32>
    %28 = vector.shape_cast %25 : vector<1x128xf32> to vector<1x1x128xf32>
    tpu.vector_store %arg8[%c0_18, %c0_19, %c0_20], %28 {strides = array<i32>} : memref<1x1x128xf32, #tpu.memory_space<vmem>>, vector<1x1x128xf32>,
    return
  }
  func.func @transform_0(%arg0: i32) -> (i32, i32) {
    %c0_i32 = arith.constant 0 : i32
    %c0_i32_0 = arith.constant 0 : i32
    return %arg0, %c0_i32 : i32, i32
  }
  func.func @transform_1(%arg0: i32) -> (i32, i32) {
    %c0_i32 = arith.constant 0 : i32
    %c0_i32_0 = arith.constant 0 : i32
    %c0_i32_1 = arith.constant 0 : i32
    return %c0_i32, %c0_i32_0 : i32, i32
  }
  func.func @transform_2(%arg0: i32) -> (i32, i32) {
    %c0_i32 = arith.constant 0 : i32
    %c0_i32_0 = arith.constant 0 : i32
    %c0_i32_1 = arith.constant 0 : i32
    return %c0_i32, %c0_i32_0 : i32, i32
  }
  func.func @transform_3(%arg0: i32) -> (i32, i32) {
    %c0_i32 = arith.constant 0 : i32
    %c0_i32_0 = arith.constant 0 : i32
    %c0_i32_1 = arith.constant 0 : i32
    return %c0_i32, %c0_i32_0 : i32, i32
  }
  func.func @transform_4(%arg0: i32) -> (i32, i32) {
    %c0_i32 = arith.constant 0 : i32
    %c0_i32_0 = arith.constant 0 : i32
    %c0_i32_1 = arith.constant 0 : i32
    return %c0_i32, %c0_i32_0 : i32, i32
  }
  func.func @transform_5(%arg0: i32) -> (i32, i32) {
    %c0_i32 = arith.constant 0 : i32
    %c0_i32_0 = arith.constant 0 : i32
    %c0_i32_1 = arith.constant 0 : i32
    return %c0_i32, %c0_i32_0 : i32, i32
  }
  func.func @transform_6(%arg0: i32) -> (i32, i32) {
    %c0_i32 = arith.constant 0 : i32
    %c0_i32_0 = arith.constant 0 : i32
    %c0_i32_1 = arith.constant 0 : i32
    return %c0_i32, %c0_i32_0 : i32, i32
  }
  func.func @transform_7(%arg0: i32) -> (i32, i32, i32) {
    %c0_i32 = arith.constant 0 : i32
    %c0_i32_0 = arith.constant 0 : i32
    %c0_i32_1 = arith.constant 0 : i32
    return %arg0, %c0_i32, %c0_i32_0 : i32, i32, i32
  }
}

module attributes {stable_mosaic.version = 11 : i64} {
  func.func @_clip_classifier_kernel(%arg0: i32, %arg1: memref<128x64xf32, #tpu.memory_space<vmem>>, %arg2: memref<64x32xf32, #tpu.memory_space<vmem>>, %arg3: memref<1x32xf32, #tpu.memory_space<vmem>>, %arg4: memref<32x32xf32, #tpu.memory_space<vmem>>, %arg5: memref<1x32xf32, #tpu.memory_space<vmem>>, %arg6: memref<8x32xf32, #tpu.memory_space<vmem>>, %arg7: memref<1x1xf32, #tpu.memory_space<vmem>>, %arg8: memref<1x1x128xf32, #tpu.memory_space<vmem>>) attributes {dimension_semantics = [#tpu.dimension_semantics<parallel>], iteration_bounds = array<i64: 1>, scalar_prefetch = 0 : i64, scratch_operands = 0 : i64, tpu.core_type = #tpu.core_type<tc>, window_params = [{transform_indices = @transform_0, window_bounds = array<i64: 128, 64>}, {pipeline_mode = #tpu.pipeline_mode<synchronous>, transform_indices = @transform_1, window_bounds = array<i64: 64, 32>}, {pipeline_mode = #tpu.pipeline_mode<synchronous>, transform_indices = @transform_2, window_bounds = array<i64: 1, 32>}, {pipeline_mode = #tpu.pipeline_mode<synchronous>, transform_indices = @transform_3, window_bounds = array<i64: 32, 32>}, {pipeline_mode = #tpu.pipeline_mode<synchronous>, transform_indices = @transform_4, window_bounds = array<i64: 1, 32>}, {pipeline_mode = #tpu.pipeline_mode<synchronous>, transform_indices = @transform_5, window_bounds = array<i64: 8, 32>}, {pipeline_mode = #tpu.pipeline_mode<synchronous>, transform_indices = @transform_6, window_bounds = array<i64: 1, 1>}, {transform_indices = @transform_7, window_bounds = array<i64: 1, 1, 128>}]} {
    %c0 = arith.constant 0 : index
    %c0_0 = arith.constant 0 : index
    %0 = vector.load %arg1[%c0, %c0_0] : memref<128x64xf32, #tpu.memory_space<vmem>>, vector<128x64xf32>
    %c0_1 = arith.constant 0 : index
    %c0_2 = arith.constant 0 : index
    %1 = vector.load %arg2[%c0_1, %c0_2] : memref<64x32xf32, #tpu.memory_space<vmem>>, vector<64x32xf32>
    %cst = arith.constant dense<0.000000e+00> : vector<128x32xf32>
    %2 = tpu.matmul %0, %1, %cst {dimension_numbers = #tpu.dot_dimension_numbers<[1], [0], [0], [1], [0, 0, 1, 1], [], []>} : vector<128x64xf32>, vector<64x32xf32>, vector<128x32xf32> -> vector<128x32xf32>
    %c0_3 = arith.constant 0 : index
    %c0_4 = arith.constant 0 : index
    %3 = vector.load %arg3[%c0_3, %c0_4] : memref<1x32xf32, #tpu.memory_space<vmem>>, vector<1x32xf32>
    %4 = vector.broadcast %3 : vector<1x32xf32> to vector<128x32xf32>
    %5 = arith.addf %2, %4 : vector<128x32xf32>
    %cst_5 = arith.constant 0.000000e+00 : f32
    %6 = vector.broadcast %cst_5 : f32 to vector<128x32xf32>
    %7 = arith.maximumf %5, %6 : vector<128x32xf32>
    %c0_6 = arith.constant 0 : index
    %c0_7 = arith.constant 0 : index
    %8 = vector.load %arg4[%c0_6, %c0_7] : memref<32x32xf32, #tpu.memory_space<vmem>>, vector<32x32xf32>
    %cst_8 = arith.constant dense<0.000000e+00> : vector<128x32xf32>
    %9 = tpu.matmul %7, %8, %cst_8 {dimension_numbers = #tpu.dot_dimension_numbers<[1], [0], [0], [1], [0, 0, 1, 1], [], []>} : vector<128x32xf32>, vector<32x32xf32>, vector<128x32xf32> -> vector<128x32xf32>
    %c0_9 = arith.constant 0 : index
    %c0_10 = arith.constant 0 : index
    %10 = vector.load %arg5[%c0_9, %c0_10] : memref<1x32xf32, #tpu.memory_space<vmem>>, vector<1x32xf32>
    %11 = vector.broadcast %10 : vector<1x32xf32> to vector<128x32xf32>
    %12 = arith.addf %9, %11 : vector<128x32xf32>
    %cst_11 = arith.constant 0.000000e+00 : f32
    %13 = vector.broadcast %cst_11 : f32 to vector<128x32xf32>
    %14 = arith.maximumf %12, %13 : vector<128x32xf32>
    %c0_12 = arith.constant 0 : index
    %c0_13 = arith.constant 0 : index
    %15 = vector.load %arg6[%c0_12, %c0_13] : memref<8x32xf32, #tpu.memory_space<vmem>>, vector<8x32xf32>
    %cst_14 = arith.constant dense<0.000000e+00> : vector<8x128xf32>
    %16 = tpu.matmul %15, %14, %cst_14 {dimension_numbers = #tpu.dot_dimension_numbers<[1], [1], [0], [0], [0, 0, 1, 0], [], []>} : vector<8x32xf32>, vector<128x32xf32>, vector<8x128xf32> -> vector<8x128xf32>
    %17 = vector.extract_strided_slice %16 {offsets = [0, 0], sizes = [1, 128], strides = [1, 1]} : vector<8x128xf32> to vector<1x128xf32>
    %c0_15 = arith.constant 0 : index
    %c0_16 = arith.constant 0 : index
    %18 = vector.load %arg7[%c0_15, %c0_16] : memref<1x1xf32, #tpu.memory_space<vmem>>, vector<1x1xf32>
    %19 = vector.broadcast %18 : vector<1x1xf32> to vector<1x128xf32>
    %20 = arith.addf %17, %19 : vector<1x128xf32>
    %21 = arith.negf %20 : vector<1x128xf32>
    %22 = math.exp %21 : vector<1x128xf32>
    %cst_17 = arith.constant 1.000000e+00 : f32
    %23 = vector.broadcast %cst_17 : f32 to vector<1x128xf32>
    %24 = arith.addf %23, %22 : vector<1x128xf32>
    %25 = arith.divf %23, %24 : vector<1x128xf32>
    %c0_18 = arith.constant 0 : index
    %c0_19 = arith.constant 0 : index
    %c0_20 = arith.constant 0 : index
    %26 = vector.load %arg8[%c0_18, %c0_19, %c0_20] : memref<1x1x128xf32, #tpu.memory_space<vmem>>, vector<1x1x128xf32>
    %27 = vector.shape_cast %26 : vector<1x1x128xf32> to vector<1x128xf32>
    %28 = vector.shape_cast %25 : vector<1x128xf32> to vector<1x1x128xf32>
    tpu.vector_store %arg8[%c0_18, %c0_19, %c0_20], %28 {strides = array<i32>} : memref<1x1x128xf32, #tpu.memory_space<vmem>>, vector<1x1x128xf32>,
    return
  }
  func.func @transform_0(%arg0: i32) -> (i32, i32) {
    %c0_i32 = arith.constant 0 : i32
    %c0_i32_0 = arith.constant 0 : i32
    return %arg0, %c0_i32 : i32, i32
  }
  func.func @transform_1(%arg0: i32) -> (i32, i32) {
    %c0_i32 = arith.constant 0 : i32
    %c0_i32_0 = arith.constant 0 : i32
    %c0_i32_1 = arith.constant 0 : i32
    return %c0_i32, %c0_i32_0 : i32, i32
  }
  func.func @transform_2(%arg0: i32) -> (i32, i32) {
    %c0_i32 = arith.constant 0 : i32
    %c0_i32_0 = arith.constant 0 : i32
    %c0_i32_1 = arith.constant 0 : i32
    return %c0_i32, %c0_i32_0 : i32, i32
  }
  func.func @transform_3(%arg0: i32) -> (i32, i32) {
    %c0_i32 = arith.constant 0 : i32
    %c0_i32_0 = arith.constant 0 : i32
    %c0_i32_1 = arith.constant 0 : i32
    return %c0_i32, %c0_i32_0 : i32, i32
  }
  func.func @transform_4(%arg0: i32) -> (i32, i32) {
    %c0_i32 = arith.constant 0 : i32
    %c0_i32_0 = arith.constant 0 : i32
    %c0_i32_1 = arith.constant 0 : i32
    return %c0_i32, %c0_i32_0 : i32, i32
  }
  func.func @transform_5(%arg0: i32) -> (i32, i32) {
    %c0_i32 = arith.constant 0 : i32
    %c0_i32_0 = arith.constant 0 : i32
    %c0_i32_1 = arith.constant 0 : i32
    return %c0_i32, %c0_i32_0 : i32, i32
  }
  func.func @transform_6(%arg0: i32) -> (i32, i32) {
    %c0_i32 = arith.constant 0 : i32
    %c0_i32_0 = arith.constant 0 : i32
    %c0_i32_1 = arith.constant 0 : i32
    return %c0_i32, %c0_i32_0 : i32, i32
  }
  func.func @transform_7(%arg0: i32) -> (i32, i32, i32) {
    %c0_i32 = arith.constant 0 : i32
    %c0_i32_0 = arith.constant 0 : i32
    %c0_i32_1 = arith.constant 0 : i32
    return %arg0, %c0_i32, %c0_i32_0 : i32, i32, i32
  }
}

</mosaic_0001>

<bundles_post_ra>
// kernel: tpu_custom_call.1
= control target key start
LH: loop header
LB: loop body
LE: loop exit
PB: predicated region body
PF: predicated region fallthrough
CT: control target
= control target key end

     0   :  { %s1114_s0 = inlined_call_operand.vmem [shape: f32[128,64], index: 0, kind: input, shape index: {}]   ;;  %s1115_s1 = inlined_call_operand.vmem [shape: f32[64,32], index: 1, kind: input, shape index: {}]   ;;  %s1116_s2 = inlined_call_operand.vmem [shape: f32[1,32], index: 2, kind: input, shape index: {}]   ;;  %s1117_s3 = inlined_call_operand.vmem [shape: f32[32,32], index: 3, kind: input, shape index: {}]   ;;  %s1118_s4 = inlined_call_operand.vmem [shape: f32[1,32], index: 4, kind: input, shape index: {}]   ;;  %s1119_s5 = inlined_call_operand.vmem [shape: f32[8,32], index: 5, kind: input, shape index: {}]   ;;  %s1120_s6 = inlined_call_operand.<no memory space> [shape: f32[1,1], index: 6, kind: input, shape index: {}]   ;;  %s1121_s7 = inlined_call_operand.hbm [shape: f32[1,1,128], index: 7, kind: output, shape index: {}]  }
   0x1   :  { %v12_v0 = vstv %s1120_s6 }
   0x2   :  { %13 = vst [vmem:[#allocation2] sm:$0x1] %v12_v0 }
   0x3   :  { %v52_v1 = vld [vmem:[%s1115_s1 + $0x38] sm:$0xff]  ;;  %v51_v2 = vld [vmem:[%s1115_s1 + $0x30] sm:$0xff]  ;;  %vm60_vm0 = vcmask 523264   ;;  %v50_v3 = vld [vmem:[%s1115_s1 + $0x28] sm:$0xff] }
   0x4   :  { %758 = vmatprep.subr.mxu0 %v52_v1  ;;  %v29_v4 = vld [vmem:[%s1114_s0] sm:$0xff]  ;;  %v48_v6 = vld [vmem:[%s1115_s1 + $0x18] sm:$0xff]  ;;  %v47_v7 = vld [vmem:[%s1115_s1 + $0x10] sm:$0xff] }
   0x5   :  { %759 = vmatpush3.msra.mxu0 %v52_v1  ;;  %774 = vmatprep.mubr.msk.f32.mxu0 %vm60_vm0, %v29_v4  ;;  %v49_v5 = vld [vmem:[%s1115_s1 + $0x20] sm:$0xff] }
   0x6   :  { %760 = vmatprep.subr.mxu0 %v51_v2 }
   0x7   :  { %761 = vmatpush3.msra.mxu0 %v51_v2 }
   0x8   :  { %762 = vmatprep.subr.mxu0 %v50_v3 }
   0x9   :  { %763 = vmatpush3.msra.mxu0 %v50_v3 }
   0xa   :  { %764 = vmatprep.subr.mxu0 %v49_v5 }
   0xb   :  { %765 = vmatpush3.msra.mxu0 %v49_v5 }
   0xc   :  { %14 = vsyncpa [#allocation4], 0  ;;  %766 = vmatprep.subr.mxu0 %v48_v6  ;;  %v46_v8 = vld [vmem:[%s1115_s1 + $0x8] sm:$0xff]  ;;  %v45_v9 = vld [vmem:[%s1115_s1] sm:$0xff]  ;;  %vm281_vm1 = vcmask 261120   ;;  %vm897_vm2 = vmmov 0  }
   0xd   :  { %767 = vmatpush3.msra.mxu0 %v48_v6  ;;  %v30_v10 = vld [vmem:[%s1114_s0 + $0x8] sm:$0xff]  ;;  %v31_v11 = vld [vmem:[%s1114_s0 + $0x10] sm:$0xff]  ;;  %v32_v12 = vld [vmem:[%s1114_s0 + $0x18] sm:$0xff]  ;;  %s899_s6 = smov [#allocation3]  }
   0xe   :  { %768 = vmatprep.subr.mxu0 %v47_v7  ;;  %v33_v13 = vld [vmem:[%s1114_s0 + $0x20] sm:$0xff]  ;;  %v34_v14 = vld [vmem:[%s1114_s0 + $0x28] sm:$0xff]  ;;  %v35_v15 = vld [vmem:[%s1114_s0 + $0x30] sm:$0xff]  ;;  %s637_s11 = sshll.u32 %s899_s6, 4  ;;  %s638_s11 = int_to_ptr.vmem [resolvable:$true] %s637_s11 }
   0xf   :  { %769 = vmatpush3.msra.mxu0 %v47_v7  ;;  %v36_v16 = vld [vmem:[%s1114_s0 + $0x38] sm:$0xff]  ;;  %v37_v17 = vld [vmem:[%s1114_s0 + $0x40] sm:$0xff]  ;;  %v38_v18 = vld [vmem:[%s1114_s0 + $0x48] sm:$0xff]  ;;  %s878_s12 = scalar_lea.vmem %s638_s11, 32  ;;  %p879_p1 = scmp.lt.s32.totalorder %s638_s11, %s638_s11 }
  0x10   :  { %770 = vmatprep.subr.mxu0 %v46_v8  ;;  %v39_v19 = vld [vmem:[%s1114_s0 + $0x50] sm:$0xff]  ;;  %v40_v20 = vld [vmem:[%s1114_s0 + $0x58] sm:$0xff]  ;;  %v41_v21 = vld [vmem:[%s1114_s0 + $0x60] sm:$0xff] }
  0x11   :  { %771 = vmatpush3.msra.mxu0 %v46_v8  ;;  %v42_v22 = vld [vmem:[%s1114_s0 + $0x68] sm:$0xff]  ;;  %v43_v23 = vld [vmem:[%s1114_s0 + $0x70] sm:$0xff]  ;;  %v44_v24 = vld [vmem:[%s1114_s0 + $0x78] sm:$0xff] }
  0x12   :  { %772 = vmatprep.subr.mxu0 %v45_v9  ;;  %v273_v25 = vld [vmem:[%s1117_s3 + $0x18] sm:$0xff]  ;;  %v272_v26 = vld [vmem:[%s1117_s3 + $0x10] sm:$0xff]  ;;  %v271_v27 = vld [vmem:[%s1117_s3 + $0x8] sm:$0xff] }
  0x13   :  { %773 = vmatpush3.msra.mxu0 %v45_v9  ;;  %798 = vmatprep.subr.mxu1 %v273_v25  ;;  %v270_v28 = vld [vmem:[%s1117_s3] sm:$0xff] }
  0x14   :  { %775 = vmatmul.mubr.msk.f32.vlgmr.msra.gmra.mxu0 %vm60_vm0, %v30_v10  ;;  %799 = vmatpush3.msra.mxu1 %v273_v25  ;;  %v645_v29 = vld [vmem:[%s1116_s2] ss:$0 sm:$0xff] }
  0x15   :  { %777 = vmatprep.mubr.msk.f32.mxu0 %vm60_vm0, %v31_v11  ;;  %800 = vmatprep.subr.mxu1 %v272_v26 }
  0x16   :  { %801 = vmatpush3.msra.mxu1 %v272_v26 }
  0x17   :  { %802 = vmatprep.subr.mxu1 %v271_v27 }
  0x18   :  { %778 = vmatmul.mubr.msk.f32.gmra.mxu0 %vm60_vm0, %v32_v12  ;;  %803 = vmatpush3.msra.mxu1 %v271_v27 }
  0x19   :  { %780 = vmatprep.mubr.msk.f32.mxu0 %vm60_vm0, %v33_v13  ;;  %804 = vmatprep.subr.mxu1 %v270_v28 }
  0x1a   :  { %805 = vmatpush3.msra.mxu1 %v270_v28 }
  0x1c   :  { %781 = vmatmul.mubr.msk.f32.gmra.mxu0 %vm60_vm0, %v34_v14  ;;  %v896_v14 = vmov 0.0  }
  0x1d   :  { %783 = vmatprep.mubr.msk.f32.mxu0 %vm60_vm0, %v35_v15  ;;  %830 = vmatprep.subr.mxu1 %v896_v14  ;;  %v613_v15 = vld [vmem:[#allocation2] sm:$0x1] }
  0x20   :  { %784 = vmatmul.mubr.msk.f32.gmra.mxu0 %vm60_vm0, %v36_v16  ;;  %v898_v16 = vmov 0  }
  0x21   :  { %786 = vmatprep.mubr.msk.f32.mxu0 %vm60_vm0, %v37_v17  ;;  %869 = vset.pattern.permute.xlu0 %v898_v16 }
  0x22   :  { %616 = vperm.xlu0 %869, %v613_v15  }
  0x24   :  { %787 = vmatmul.mubr.msk.f32.gmra.mxu0 %vm60_vm0, %v38_v18 }
  0x25   :  { %789 = vmatprep.mubr.msk.f32.mxu0 %vm60_vm0, %v39_v19 }
  0x28   :  { %790 = vmatmul.mubr.msk.f32.gmra.mxu0 %vm60_vm0, %v40_v20 }
  0x29   :  { %792 = vmatprep.mubr.msk.f32.mxu0 %vm60_vm0, %v41_v21 }
  0x2c   :  { %793 = vmatmul.mubr.msk.f32.gmra.mxu0 %vm60_vm0, %v42_v22 }
  0x2d   :  { %795 = vmatprep.mubr.msk.f32.mxu0 %vm60_vm0, %v43_v23 }
  0x30   :  { %796 = vmatmul.mubr.msk.f32.gmra.mxu0 %vm60_vm0, %v44_v24 }
  0xd4   :  { %v776_v30 = vpop.f32.mrf.mxu0 }
  0xd5   :  { %v181_v31 = vadd.f32 %v776_v30, %v645_v29 }
  0xd6   :  { %v175_v32 = vpop.f32.mrf.mxu0 }
  0xd7   :  { %v176_v33 = vadd.f32 %v645_v29, %v175_v32  ;;  %v255_v36 = vmax.f32 %v181_v31, 0.0  ;;  %v662_v31 = vld [vmem:[%s1118_s4] ss:$0 sm:$0xff] }
  0xd8   :  { %v779_v34 = vpop.f32.mrf.mxu0 }
  0xd9   :  { %v254_v35 = vmax.f32 %v176_v33, 0.0  ;;  %v191_v37 = vadd.f32 %v779_v34, %v645_v29 }
  0xda   :  { %v185_v38 = vpop.f32.mrf.mxu0 }
  0xdb   :  { %v186_v39 = vadd.f32 %v645_v29, %v185_v38  ;;  %806 = vmatprep.mubr.msk.f32.mxu1 %vm281_vm1, %v254_v35  ;;  %v257_v42 = vmax.f32 %v191_v37, 0.0 }
  0xdc   :  { %v782_v40 = vpop.f32.mrf.mxu0  ;;  %807 = vmatmul.mubr.msk.f32.vlgmr.msra.gmra.mxu1 %vm281_vm1, %v255_v36 }
  0xdd   :  { %v256_v41 = vmax.f32 %v186_v39, 0.0  ;;  %v201_v43 = vadd.f32 %v782_v40, %v645_v29 }
  0xde   :  { %v195_v44 = vpop.f32.mrf.mxu0 }
  0xdf   :  { %v196_v45 = vadd.f32 %v645_v29, %v195_v44  ;;  %809 = vmatprep.mubr.msk.f32.mxu1 %vm281_vm1, %v256_v41  ;;  %v259_v48 = vmax.f32 %v201_v43, 0.0 }
  0xe0   :  { %v785_v46 = vpop.f32.mrf.mxu0  ;;  %810 = vmatmul.mubr.msk.f32.gmra.mxu1 %vm281_vm1, %v257_v42 }
  0xe1   :  { %v258_v47 = vmax.f32 %v196_v45, 0.0  ;;  %v211_v49 = vadd.f32 %v785_v46, %v645_v29 }
  0xe2   :  { %v205_v50 = vpop.f32.mrf.mxu0 }
  0xe3   :  { %v206_v51 = vadd.f32 %v645_v29, %v205_v50  ;;  %812 = vmatprep.mubr.msk.f32.mxu1 %vm281_vm1, %v258_v47  ;;  %v261_v54 = vmax.f32 %v211_v49, 0.0 }
  0xe4   :  { %v788_v52 = vpop.f32.mrf.mxu0  ;;  %813 = vmatmul.mubr.msk.f32.gmra.mxu1 %vm281_vm1, %v259_v48 }
  0xe5   :  { %v260_v53 = vmax.f32 %v206_v51, 0.0  ;;  %v221_v55 = vadd.f32 %v788_v52, %v645_v29 }
  0xe6   :  { %v215_v56 = vpop.f32.mrf.mxu0 }
  0xe7   :  { %v216_v57 = vadd.f32 %v645_v29, %v215_v56  ;;  %815 = vmatprep.mubr.msk.f32.mxu1 %vm281_vm1, %v260_v53  ;;  %v263_v60 = vmax.f32 %v221_v55, 0.0 }
  0xe8   :  { %v791_v58 = vpop.f32.mrf.mxu0  ;;  %816 = vmatmul.mubr.msk.f32.gmra.mxu1 %vm281_vm1, %v261_v54 }
  0xe9   :  { %v262_v59 = vmax.f32 %v216_v57, 0.0  ;;  %v231_v61 = vadd.f32 %v791_v58, %v645_v29 }
  0xea   :  { %v225_v62 = vpop.f32.mrf.mxu0 }
  0xeb   :  { %v226_v63 = vadd.f32 %v645_v29, %v225_v62  ;;  %818 = vmatprep.mubr.msk.f32.mxu1 %vm281_vm1, %v262_v59  ;;  %v265_v2 = vmax.f32 %v231_v61, 0.0 }
  0xec   :  { %v794_v0 = vpop.f32.mrf.mxu0  ;;  %819 = vmatmul.mubr.msk.f32.gmra.mxu1 %vm281_vm1, %v263_v60 }
  0xed   :  { %v264_v1 = vmax.f32 %v226_v63, 0.0  ;;  %v241_v3 = vadd.f32 %v794_v0, %v645_v29 }
  0xee   :  { %v235_v4 = vpop.f32.mrf.mxu0 }
  0xef   :  { %v236_v5 = vadd.f32 %v645_v29, %v235_v4  ;;  %821 = vmatprep.mubr.msk.f32.mxu1 %vm281_vm1, %v264_v1  ;;  %v267_v8 = vmax.f32 %v241_v3, 0.0  ;;  %v619_v3 = vlaneseq }
  0xf0   :  { %v797_v6 = vpop.f32.mrf.mxu0  ;;  %822 = vmatmul.mubr.msk.f32.gmra.mxu1 %vm281_vm1, %v265_v2  ;;  %v491_v2 = vld [vmem:[%s1119_s5] sm:$0xff]  ;;  %s874_s5 = scalar_lea.vmem %s638_s11, 16 }
  0xf1   :  { %v266_v7 = vmax.f32 %v236_v5, 0.0  ;;  %v251_v9 = vadd.f32 %v797_v6, %v645_v29  ;;  %v620_v4 = vshrl.u32 %v619_v3, 7  ;;  %v617_v6 = vpop.permute.xlu0 %616  ;;  %p875_p0 = scmp.ne.s32.totalorder %s638_s11, %s874_s5  ;;  %p880_p2 = scmp.lt.s32.totalorder %s878_s12, %s874_s5 }
  0xf2   :  { %v245_v10 = vpop.f32.mrf.mxu0 }
  0xf3   :  { %v246_v11 = vadd.f32 %v645_v29, %v245_v10  ;;  %824 = vmatprep.mubr.msk.f32.mxu1 %vm281_vm1, %v266_v7  ;;  %v269_v13 = vmax.f32 %v251_v9, 0.0  ;;  %v621_v5 = vsub.s32 0, %v620_v4  ;;  %p881_p3 = por %p880_p2, %p879_p1 }
  0xf4   :  { %825 = vmatmul.mubr.msk.f32.gmra.mxu1 %vm281_vm1, %v267_v8 }
  0xf5   :  { %v268_v12 = vmax.f32 %v246_v11, 0.0  ;;  %v622_v7 = vrot.slane %v617_v6, %v621_v5  ;;  %p882_p4 = pnand %p881_p3, %p875_p0 }
  0xf7   :  { %827 = vmatprep.mubr.msk.f32.mxu1 %vm281_vm1, %v268_v12 }
  0xf8   :  { %828 = vmatmul.mubr.msk.f32.gmra.mxu1 %vm281_vm1, %v269_v13 }
  0xf9   :  { %862 = vmatprep.mubr.msk.f32.mxu1 %vm897_vm2, %v896_v14 }
 0x19c   :  { %v1064_v17 = vpop.f32.mrf.mxu1 }
 0x19d   :  { %v402_v61 = vadd.f32 %v1064_v17, %v662_v31 }
 0x19e   :  { %v1066_v18 = vpop.f32.mrf.mxu1 }
 0x19f   :  { %v476_v63 = vmax.f32 %v402_v61, 0.0  ;;  %v397_v0 = vadd.f32 %v662_v31, %v1066_v18 }
 0x1a0   :  { %v811_v19 = vpop.f32.mrf.mxu1 }
 0x1a1   :  { %v412_v57 = vadd.f32 %v811_v19, %v662_v31  ;;  %v475_v1 = vmax.f32 %v397_v0, 0.0 }
 0x1a2   :  { %v1068_v20 = vpop.f32.mrf.mxu1 }
 0x1a3   :  { %v478_v59 = vmax.f32 %v412_v57, 0.0  ;;  %v407_v60 = vadd.f32 %v662_v31, %v1068_v20 }
 0x1a4   :  { %v814_v21 = vpop.f32.mrf.mxu1 }
 0x1a5   :  { %v422_v53 = vadd.f32 %v814_v21, %v662_v31  ;;  %v477_v62 = vmax.f32 %v407_v60, 0.0 }
 0x1a6   :  { %v416_v22 = vpop.f32.mrf.mxu1 }
 0x1a7   :  { %v480_v55 = vmax.f32 %v422_v53, 0.0  ;;  %v417_v56 = vadd.f32 %v662_v31, %v416_v22 }
 0x1a8   :  { %v817_v23 = vpop.f32.mrf.mxu1 }
 0x1a9   :  { %v432_v49 = vadd.f32 %v817_v23, %v662_v31  ;;  %v479_v58 = vmax.f32 %v417_v56, 0.0 }
 0x1aa   :  { %v426_v24 = vpop.f32.mrf.mxu1 }
 0x1ab   :  { %v482_v51 = vmax.f32 %v432_v49, 0.0  ;;  %v427_v52 = vadd.f32 %v662_v31, %v426_v24 }
 0x1ac   :  { %v820_v25 = vpop.f32.mrf.mxu1 }
 0x1ad   :  { %v442_v45 = vadd.f32 %v820_v25, %v662_v31  ;;  %v481_v54 = vmax.f32 %v427_v52, 0.0 }
 0x1ae   :  { %v436_v26 = vpop.f32.mrf.mxu1 }
 0x1af   :  { %v484_v47 = vmax.f32 %v442_v45, 0.0  ;;  %v437_v48 = vadd.f32 %v662_v31, %v436_v26 }
 0x1b0   :  { %v823_v27 = vpop.f32.mrf.mxu1 }
 0x1b1   :  { %v452_v41 = vadd.f32 %v823_v27, %v662_v31  ;;  %v483_v50 = vmax.f32 %v437_v48, 0.0 }
 0x1b2   :  { %v446_v28 = vpop.f32.mrf.mxu1 }
 0x1b3   :  { %v486_v43 = vmax.f32 %v452_v41, 0.0  ;;  %v447_v44 = vadd.f32 %v662_v31, %v446_v28 }
 0x1b4   :  { %v826_v29 = vpop.f32.mrf.mxu1 }
 0x1b5   :  { %v462_v37 = vadd.f32 %v826_v29, %v662_v31  ;;  %v485_v46 = vmax.f32 %v447_v44, 0.0 }
 0x1b6   :  { %v456_v30 = vpop.f32.mrf.mxu1 }
 0x1b7   :  { %v488_v39 = vmax.f32 %v462_v37, 0.0  ;;  %v457_v40 = vadd.f32 %v662_v31, %v456_v30 }
 0x1b8   :  { %v829_v32 = vpop.f32.mrf.mxu1 }
 0x1b9   :  { %v472_v33 = vadd.f32 %v829_v32, %v662_v31  ;;  %v487_v42 = vmax.f32 %v457_v40, 0.0 }
 0x1ba   :  { %v466_v34 = vpop.f32.mrf.mxu1 }
 0x1bb   :  { %v490_v35 = vmax.f32 %v472_v33, 0.0  ;;  %v467_v36 = vadd.f32 %v662_v31, %v466_v34 }
 0x1bd   :  { %831 = vmatpush3.xpose.msk.msra.mxu1 %vm281_vm1, %v490_v35  ;;  %v489_v38 = vmax.f32 %v467_v36, 0.0 }
 0x1be   :  { %832 = vmatprep.subr.mxu1 %v896_v14 }
 0x1c1   :  { %833 = vmatpush3.xpose.msk.msra.mxu1 %vm281_vm1, %v489_v38 }
 0x1c2   :  { %834 = vmatprep.subr.mxu1 %v896_v14 }
 0x1c5   :  { %835 = vmatpush3.xpose.msk.msra.mxu1 %vm281_vm1, %v488_v39 }
 0x1c6   :  { %836 = vmatprep.subr.mxu1 %v896_v14 }
 0x1c9   :  { %837 = vmatpush3.xpose.msk.msra.mxu1 %vm281_vm1, %v487_v42 }
 0x1ca   :  { %838 = vmatprep.subr.mxu1 %v896_v14 }
 0x1cd   :  { %839 = vmatpush3.xpose.msk.msra.mxu1 %vm281_vm1, %v486_v43 }
 0x1ce   :  { %840 = vmatprep.subr.mxu1 %v896_v14 }
 0x1d1   :  { %841 = vmatpush3.xpose.msk.msra.mxu1 %vm281_vm1, %v485_v46 }
 0x1d2   :  { %842 = vmatprep.subr.mxu1 %v896_v14 }
 0x1d5   :  { %843 = vmatpush3.xpose.msk.msra.mxu1 %vm281_vm1, %v484_v47 }
 0x1d6   :  { %844 = vmatprep.subr.mxu1 %v896_v14 }
 0x1d9   :  { %845 = vmatpush3.xpose.msk.msra.mxu1 %vm281_vm1, %v483_v50 }
 0x1da   :  { %846 = vmatprep.subr.mxu1 %v896_v14 }
 0x1dd   :  { %847 = vmatpush3.xpose.msk.msra.mxu1 %vm281_vm1, %v482_v51 }
 0x1de   :  { %848 = vmatprep.subr.mxu1 %v896_v14 }
 0x1e1   :  { %849 = vmatpush3.xpose.msk.msra.mxu1 %vm281_vm1, %v481_v54 }
 0x1e2   :  { %850 = vmatprep.subr.mxu1 %v896_v14 }
 0x1e5   :  { %851 = vmatpush3.xpose.msk.msra.mxu1 %vm281_vm1, %v480_v55 }
 0x1e6   :  { %852 = vmatprep.subr.mxu1 %v896_v14 }
 0x1e9   :  { %853 = vmatpush3.xpose.msk.msra.mxu1 %vm281_vm1, %v479_v58 }
 0x1ea   :  { %854 = vmatprep.subr.mxu1 %v896_v14 }
 0x1ed   :  { %855 = vmatpush3.xpose.msk.msra.mxu1 %vm281_vm1, %v478_v59 }
 0x1ee   :  { %856 = vmatprep.subr.mxu1 %v896_v14 }
 0x1f1   :  { %857 = vmatpush3.xpose.msk.msra.mxu1 %vm281_vm1, %v477_v62 }
 0x1f2   :  { %858 = vmatprep.subr.mxu1 %v896_v14 }
 0x1f5   :  { %859 = vmatpush3.xpose.msk.msra.mxu1 %vm281_vm1, %v476_v63 }
 0x1f6   :  { %860 = vmatprep.subr.mxu1 %v896_v14 }
 0x1f9   :  { %861 = vmatpush3.xpose.msk.msra.mxu1 %vm281_vm1, %v475_v1 }
 0x1fc   :  { %863 = vmatmul.mubr.msk.f32.vlgmr.msra.gmra.mxu1 %vm281_vm1, %v491_v2 }
 0x2bc   :  { %v609_v8 = vpop.f32.mrf.mxu1 }
 0x2bd   :  { %v623_v9 = vadd.f32 %v622_v7, %v609_v8 }
 0x2be   :  { %v864_v10 = vpop.f32.mrf.mxu1 }
 0x2bf   :  { %v696_v11 = vmul.f32 -1.442695, %v623_v9 }
 0x2c1   :  { %870 = vpow2.f32 %v696_v11 }
 0x2ce   :  { %v871_v12 = vpop.eup %870 }
 0x2cf   :  { %v627_v13 = vadd.f32 1.0, %v871_v12 }
 0x2d1   :  { %872 = vrcp.f32 %v627_v13 }
 0x2de   :  { %v873_v14 = vpop.eup %872 }
 0x2df   :  { %630 = vst [vmem:[#allocation3] sm:$0x1] %v873_v14 }
 0x2e0   :  { %885 = shalt.err (!%p882_p4)
}
 0x2e1   :  { %640 = dma.vmem_to_hbm [thread:$0]  %s638_s11, 16, %s1121_s7, [#allocation4]  }
 0x2e2   :  { %894 = dma.done.wait [#allocation4], 16  }
 0x2e3   :  { %895 = vsyncadd [#allocation4], 4294967280 }
 0x2e4   :  { %644 = vsyncpa [#allocation4], 1 }

// kernel: tpu_custom_call.1
= control target key start
LH: loop header
LB: loop body
LE: loop exit
PB: predicated region body
PF: predicated region fallthrough
CT: control target
= control target key end

     0   :  { %s1114_s0 = inlined_call_operand.vmem [shape: f32[128,64], index: 0, kind: input, shape index: {}]   ;;  %s1115_s1 = inlined_call_operand.vmem [shape: f32[64,32], index: 1, kind: input, shape index: {}]   ;;  %s1116_s2 = inlined_call_operand.vmem [shape: f32[1,32], index: 2, kind: input, shape index: {}]   ;;  %s1117_s3 = inlined_call_operand.vmem [shape: f32[32,32], index: 3, kind: input, shape index: {}]   ;;  %s1118_s4 = inlined_call_operand.vmem [shape: f32[1,32], index: 4, kind: input, shape index: {}]   ;;  %s1119_s5 = inlined_call_operand.vmem [shape: f32[8,32], index: 5, kind: input, shape index: {}]   ;;  %s1120_s6 = inlined_call_operand.<no memory space> [shape: f32[1,1], index: 6, kind: input, shape index: {}]   ;;  %s1121_s7 = inlined_call_operand.hbm [shape: f32[1,1,128], index: 7, kind: output, shape index: {}]  }
   0x1   :  { %v12_v0 = vstv %s1120_s6 }
   0x2   :  { %13 = vst [vmem:[#allocation2] sm:$0x1] %v12_v0 }
   0x3   :  { %v52_v1 = vld [vmem:[%s1115_s1 + $0x38] sm:$0xff]  ;;  %v51_v2 = vld [vmem:[%s1115_s1 + $0x30] sm:$0xff]  ;;  %vm60_vm0 = vcmask 523264   ;;  %v50_v3 = vld [vmem:[%s1115_s1 + $0x28] sm:$0xff] }
   0x4   :  { %758 = vmatprep.subr.mxu0 %v52_v1  ;;  %v29_v4 = vld [vmem:[%s1114_s0] sm:$0xff]  ;;  %v48_v6 = vld [vmem:[%s1115_s1 + $0x18] sm:$0xff]  ;;  %v47_v7 = vld [vmem:[%s1115_s1 + $0x10] sm:$0xff] }
   0x5   :  { %759 = vmatpush3.msra.mxu0 %v52_v1  ;;  %774 = vmatprep.mubr.msk.f32.mxu0 %vm60_vm0, %v29_v4  ;;  %v49_v5 = vld [vmem:[%s1115_s1 + $0x20] sm:$0xff] }
   0x6   :  { %760 = vmatprep.subr.mxu0 %v51_v2 }
   0x7   :  { %761 = vmatpush3.msra.mxu0 %v51_v2 }
   0x8   :  { %762 = vmatprep.subr.mxu0 %v50_v3 }
   0x9   :  { %763 = vmatpush3.msra.mxu0 %v50_v3 }
   0xa   :  { %764 = vmatprep.subr.mxu0 %v49_v5 }
   0xb   :  { %765 = vmatpush3.msra.mxu0 %v49_v5 }
   0xc   :  { %14 = vsyncpa [#allocation4], 0  ;;  %766 = vmatprep.subr.mxu0 %v48_v6  ;;  %v46_v8 = vld [vmem:[%s1115_s1 + $0x8] sm:$0xff]  ;;  %v45_v9 = vld [vmem:[%s1115_s1] sm:$0xff]  ;;  %vm281_vm1 = vcmask 261120   ;;  %vm897_vm2 = vmmov 0  }
   0xd   :  { %767 = vmatpush3.msra.mxu0 %v48_v6  ;;  %v30_v10 = vld [vmem:[%s1114_s0 + $0x8] sm:$0xff]  ;;  %v31_v11 = vld [vmem:[%s1114_s0 + $0x10] sm:$0xff]  ;;  %v32_v12 = vld [vmem:[%s1114_s0 + $0x18] sm:$0xff]  ;;  %s899_s6 = smov [#allocation3]  }
   0xe   :  { %768 = vmatprep.subr.mxu0 %v47_v7  ;;  %v33_v13 = vld [vmem:[%s1114_s0 + $0x20] sm:$0xff]  ;;  %v34_v14 = vld [vmem:[%s1114_s0 + $0x28] sm:$0xff]  ;;  %v35_v15 = vld [vmem:[%s1114_s0 + $0x30] sm:$0xff]  ;;  %s637_s11 = sshll.u32 %s899_s6, 4  ;;  %s638_s11 = int_to_ptr.vmem [resolvable:$true] %s637_s11 }
   0xf   :  { %769 = vmatpush3.msra.mxu0 %v47_v7  ;;  %v36_v16 = vld [vmem:[%s1114_s0 + $0x38] sm:$0xff]  ;;  %v37_v17 = vld [vmem:[%s1114_s0 + $0x40] sm:$0xff]  ;;  %v38_v18 = vld [vmem:[%s1114_s0 + $0x48] sm:$0xff]  ;;  %s878_s12 = scalar_lea.vmem %s638_s11, 32  ;;  %p879_p1 = scmp.lt.s32.totalorder %s638_s11, %s638_s11 }
  0x10   :  { %770 = vmatprep.subr.mxu0 %v46_v8  ;;  %v39_v19 = vld [vmem:[%s1114_s0 + $0x50] sm:$0xff]  ;;  %v40_v20 = vld [vmem:[%s1114_s0 + $0x58] sm:$0xff]  ;;  %v41_v21 = vld [vmem:[%s1114_s0 + $0x60] sm:$0xff] }
  0x11   :  { %771 = vmatpush3.msra.mxu0 %v46_v8  ;;  %v42_v22 = vld [vmem:[%s1114_s0 + $0x68] sm:$0xff]  ;;  %v43_v23 = vld [vmem:[%s1114_s0 + $0x70] sm:$0xff]  ;;  %v44_v24 = vld [vmem:[%s1114_s0 + $0x78] sm:$0xff] }
  0x12   :  { %772 = vmatprep.subr.mxu0 %v45_v9  ;;  %v273_v25 = vld [vmem:[%s1117_s3 + $0x18] sm:$0xff]  ;;  %v272_v26 = vld [vmem:[%s1117_s3 + $0x10] sm:$0xff]  ;;  %v271_v27 = vld [vmem:[%s1117_s3 + $0x8] sm:$0xff] }
  0x13   :  { %773 = vmatpush3.msra.mxu0 %v45_v9  ;;  %798 = vmatprep.subr.mxu1 %v273_v25  ;;  %v270_v28 = vld [vmem:[%s1117_s3] sm:$0xff] }
  0x14   :  { %775 = vmatmul.mubr.msk.f32.vlgmr.msra.gmra.mxu0 %vm60_vm0, %v30_v10  ;;  %799 = vmatpush3.msra.mxu1 %v273_v25  ;;  %v645_v29 = vld [vmem:[%s1116_s2] ss:$0 sm:$0xff] }
  0x15   :  { %777 = vmatprep.mubr.msk.f32.mxu0 %vm60_vm0, %v31_v11  ;;  %800 = vmatprep.subr.mxu1 %v272_v26 }
  0x16   :  { %801 = vmatpush3.msra.mxu1 %v272_v26 }
  0x17   :  { %802 = vmatprep.subr.mxu1 %v271_v27 }
  0x18   :  { %778 = vmatmul.mubr.msk.f32.gmra.mxu0 %vm60_vm0, %v32_v12  ;;  %803 = vmatpush3.msra.mxu1 %v271_v27 }
  0x19   :  { %780 = vmatprep.mubr.msk.f32.mxu0 %vm60_vm0, %v33_v13  ;;  %804 = vmatprep.subr.mxu1 %v270_v28 }
  0x1a   :  { %805 = vmatpush3.msra.mxu1 %v270_v28 }
  0x1c   :  { %781 = vmatmul.mubr.msk.f32.gmra.mxu0 %vm60_vm0, %v34_v14  ;;  %v896_v14 = vmov 0.0  }
  0x1d   :  { %783 = vmatprep.mubr.msk.f32.mxu0 %vm60_vm0, %v35_v15  ;;  %830 = vmatprep.subr.mxu1 %v896_v14  ;;  %v613_v15 = vld [vmem:[#allocation2] sm:$0x1] }
  0x20   :  { %784 = vmatmul.mubr.msk.f32.gmra.mxu0 %vm60_vm0, %v36_v16  ;;  %v898_v16 = vmov 0  }
  0x21   :  { %786 = vmatprep.mubr.msk.f32.mxu0 %vm60_vm0, %v37_v17  ;;  %869 = vset.pattern.permute.xlu0 %v898_v16 }
  0x22   :  { %616 = vperm.xlu0 %869, %v613_v15  }
  0x24   :  { %787 = vmatmul.mubr.msk.f32.gmra.mxu0 %vm60_vm0, %v38_v18 }
  0x25   :  { %789 = vmatprep.mubr.msk.f32.mxu0 %vm60_vm0, %v39_v19 }
  0x28   :  { %790 = vmatmul.mubr.msk.f32.gmra.mxu0 %vm60_vm0, %v40_v20 }
  0x29   :  { %792 = vmatprep.mubr.msk.f32.mxu0 %vm60_vm0, %v41_v21 }
  0x2c   :  { %793 = vmatmul.mubr.msk.f32.gmra.mxu0 %vm60_vm0, %v42_v22 }
  0x2d   :  { %795 = vmatprep.mubr.msk.f32.mxu0 %vm60_vm0, %v43_v23 }
  0x30   :  { %796 = vmatmul.mubr.msk.f32.gmra.mxu0 %vm60_vm0, %v44_v24 }
  0xd4   :  { %v776_v30 = vpop.f32.mrf.mxu0 }
  0xd5   :  { %v181_v31 = vadd.f32 %v776_v30, %v645_v29 }
  0xd6   :  { %v175_v32 = vpop.f32.mrf.mxu0 }
  0xd7   :  { %v176_v33 = vadd.f32 %v645_v29, %v175_v32  ;;  %v255_v36 = vmax.f32 %v181_v31, 0.0  ;;  %v662_v31 = vld [vmem:[%s1118_s4] ss:$0 sm:$0xff] }
  0xd8   :  { %v779_v34 = vpop.f32.mrf.mxu0 }
  0xd9   :  { %v254_v35 = vmax.f32 %v176_v33, 0.0  ;;  %v191_v37 = vadd.f32 %v779_v34, %v645_v29 }
  0xda   :  { %v185_v38 = vpop.f32.mrf.mxu0 }
  0xdb   :  { %v186_v39 = vadd.f32 %v645_v29, %v185_v38  ;;  %806 = vmatprep.mubr.msk.f32.mxu1 %vm281_vm1, %v254_v35  ;;  %v257_v42 = vmax.f32 %v191_v37, 0.0 }
  0xdc   :  { %v782_v40 = vpop.f32.mrf.mxu0  ;;  %807 = vmatmul.mubr.msk.f32.vlgmr.msra.gmra.mxu1 %vm281_vm1, %v255_v36 }
  0xdd   :  { %v256_v41 = vmax.f32 %v186_v39, 0.0  ;;  %v201_v43 = vadd.f32 %v782_v40, %v645_v29 }
  0xde   :  { %v195_v44 = vpop.f32.mrf.mxu0 }
  0xdf   :  { %v196_v45 = vadd.f32 %v645_v29, %v195_v44  ;;  %809 = vmatprep.mubr.msk.f32.mxu1 %vm281_vm1, %v256_v41  ;;  %v259_v48 = vmax.f32 %v201_v43, 0.0 }
  0xe0   :  { %v785_v46 = vpop.f32.mrf.mxu0  ;;  %810 = vmatmul.mubr.msk.f32.gmra.mxu1 %vm281_vm1, %v257_v42 }
  0xe1   :  { %v258_v47 = vmax.f32 %v196_v45, 0.0  ;;  %v211_v49 = vadd.f32 %v785_v46, %v645_v29 }
  0xe2   :  { %v205_v50 = vpop.f32.mrf.mxu0 }
  0xe3   :  { %v206_v51 = vadd.f32 %v645_v29, %v205_v50  ;;  %812 = vmatprep.mubr.msk.f32.mxu1 %vm281_vm1, %v258_v47  ;;  %v261_v54 = vmax.f32 %v211_v49, 0.0 }
  0xe4   :  { %v788_v52 = vpop.f32.mrf.mxu0  ;;  %813 = vmatmul.mubr.msk.f32.gmra.mxu1 %vm281_vm1, %v259_v48 }
  0xe5   :  { %v260_v53 = vmax.f32 %v206_v51, 0.0  ;;  %v221_v55 = vadd.f32 %v788_v52, %v645_v29 }
  0xe6   :  { %v215_v56 = vpop.f32.mrf.mxu0 }
  0xe7   :  { %v216_v57 = vadd.f32 %v645_v29, %v215_v56  ;;  %815 = vmatprep.mubr.msk.f32.mxu1 %vm281_vm1, %v260_v53  ;;  %v263_v60 = vmax.f32 %v221_v55, 0.0 }
  0xe8   :  { %v791_v58 = vpop.f32.mrf.mxu0  ;;  %816 = vmatmul.mubr.msk.f32.gmra.mxu1 %vm281_vm1, %v261_v54 }
  0xe9   :  { %v262_v59 = vmax.f32 %v216_v57, 0.0  ;;  %v231_v61 = vadd.f32 %v791_v58, %v645_v29 }
  0xea   :  { %v225_v62 = vpop.f32.mrf.mxu0 }
  0xeb   :  { %v226_v63 = vadd.f32 %v645_v29, %v225_v62  ;;  %818 = vmatprep.mubr.msk.f32.mxu1 %vm281_vm1, %v262_v59  ;;  %v265_v2 = vmax.f32 %v231_v61, 0.0 }
  0xec   :  { %v794_v0 = vpop.f32.mrf.mxu0  ;;  %819 = vmatmul.mubr.msk.f32.gmra.mxu1 %vm281_vm1, %v263_v60 }
  0xed   :  { %v264_v1 = vmax.f32 %v226_v63, 0.0  ;;  %v241_v3 = vadd.f32 %v794_v0, %v645_v29 }
  0xee   :  { %v235_v4 = vpop.f32.mrf.mxu0 }
  0xef   :  { %v236_v5 = vadd.f32 %v645_v29, %v235_v4  ;;  %821 = vmatprep.mubr.msk.f32.mxu1 %vm281_vm1, %v264_v1  ;;  %v267_v8 = vmax.f32 %v241_v3, 0.0  ;;  %v619_v3 = vlaneseq }
  0xf0   :  { %v797_v6 = vpop.f32.mrf.mxu0  ;;  %822 = vmatmul.mubr.msk.f32.gmra.mxu1 %vm281_vm1, %v265_v2  ;;  %v491_v2 = vld [vmem:[%s1119_s5] sm:$0xff]  ;;  %s874_s5 = scalar_lea.vmem %s638_s11, 16 }
  0xf1   :  { %v266_v7 = vmax.f32 %v236_v5, 0.0  ;;  %v251_v9 = vadd.f32 %v797_v6, %v645_v29  ;;  %v620_v4 = vshrl.u32 %v619_v3, 7  ;;  %v617_v6 = vpop.permute.xlu0 %616  ;;  %p875_p0 = scmp.ne.s32.totalorder %s638_s11, %s874_s5  ;;  %p880_p2 = scmp.lt.s32.totalorder %s878_s12, %s874_s5 }
  0xf2   :  { %v245_v10 = vpop.f32.mrf.mxu0 }
  0xf3   :  { %v246_v11 = vadd.f32 %v645_v29, %v245_v10  ;;  %824 = vmatprep.mubr.msk.f32.mxu1 %vm281_vm1, %v266_v7  ;;  %v269_v13 = vmax.f32 %v251_v9, 0.0  ;;  %v621_v5 = vsub.s32 0, %v620_v4  ;;  %p881_p3 = por %p880_p2, %p879_p1 }
  0xf4   :  { %825 = vmatmul.mubr.msk.f32.gmra.mxu1 %vm281_vm1, %v267_v8 }
  0xf5   :  { %v268_v12 = vmax.f32 %v246_v11, 0.0  ;;  %v622_v7 = vrot.slane %v617_v6, %v621_v5  ;;  %p882_p4 = pnand %p881_p3, %p875_p0 }
  0xf7   :  { %827 = vmatprep.mubr.msk.f32.mxu1 %vm281_vm1, %v268_v12 }
  0xf8   :  { %828 = vmatmul.mubr.msk.f32.gmra.mxu1 %vm281_vm1, %v269_v13 }
  0xf9   :  { %862 = vmatprep.mubr.msk.f32.mxu1 %vm897_vm2, %v896_v14 }
 0x19c   :  { %v1064_v17 = vpop.f32.mrf.mxu1 }
 0x19d   :  { %v402_v61 = vadd.f32 %v1064_v17, %v662_v31 }
 0x19e   :  { %v1066_v18 = vpop.f32.mrf.mxu1 }
 0x19f   :  { %v476_v63 = vmax.f32 %v402_v61, 0.0  ;;  %v397_v0 = vadd.f32 %v662_v31, %v1066_v18 }
 0x1a0   :  { %v811_v19 = vpop.f32.mrf.mxu1 }
 0x1a1   :  { %v412_v57 = vadd.f32 %v811_v19, %v662_v31  ;;  %v475_v1 = vmax.f32 %v397_v0, 0.0 }
 0x1a2   :  { %v1068_v20 = vpop.f32.mrf.mxu1 }
 0x1a3   :  { %v478_v59 = vmax.f32 %v412_v57, 0.0  ;;  %v407_v60 = vadd.f32 %v662_v31, %v1068_v20 }
 0x1a4   :  { %v814_v21 = vpop.f32.mrf.mxu1 }
 0x1a5   :  { %v422_v53 = vadd.f32 %v814_v21, %v662_v31  ;;  %v477_v62 = vmax.f32 %v407_v60, 0.0 }
 0x1a6   :  { %v416_v22 = vpop.f32.mrf.mxu1 }
 0x1a7   :  { %v480_v55 = vmax.f32 %v422_v53, 0.0  ;;  %v417_v56 = vadd.f32 %v662_v31, %v416_v22 }
 0x1a8   :  { %v817_v23 = vpop.f32.mrf.mxu1 }
 0x1a9   :  { %v432_v49 = vadd.f32 %v817_v23, %v662_v31  ;;  %v479_v58 = vmax.f32 %v417_v56, 0.0 }
 0x1aa   :  { %v426_v24 = vpop.f32.mrf.mxu1 }
 0x1ab   :  { %v482_v51 = vmax.f32 %v432_v49, 0.0  ;;  %v427_v52 = vadd.f32 %v662_v31, %v426_v24 }
 0x1ac   :  { %v820_v25 = vpop.f32.mrf.mxu1 }
 0x1ad   :  { %v442_v45 = vadd.f32 %v820_v25, %v662_v31  ;;  %v481_v54 = vmax.f32 %v427_v52, 0.0 }
 0x1ae   :  { %v436_v26 = vpop.f32.mrf.mxu1 }
 0x1af   :  { %v484_v47 = vmax.f32 %v442_v45, 0.0  ;;  %v437_v48 = vadd.f32 %v662_v31, %v436_v26 }
 0x1b0   :  { %v823_v27 = vpop.f32.mrf.mxu1 }
 0x1b1   :  { %v452_v41 = vadd.f32 %v823_v27, %v662_v31  ;;  %v483_v50 = vmax.f32 %v437_v48, 0.0 }
 0x1b2   :  { %v446_v28 = vpop.f32.mrf.mxu1 }
 0x1b3   :  { %v486_v43 = vmax.f32 %v452_v41, 0.0  ;;  %v447_v44 = vadd.f32 %v662_v31, %v446_v28 }
 0x1b4   :  { %v826_v29 = vpop.f32.mrf.mxu1 }
 0x1b5   :  { %v462_v37 = vadd.f32 %v826_v29, %v662_v31  ;;  %v485_v46 = vmax.f32 %v447_v44, 0.0 }
 0x1b6   :  { %v456_v30 = vpop.f32.mrf.mxu1 }
 0x1b7   :  { %v488_v39 = vmax.f32 %v462_v37, 0.0  ;;  %v457_v40 = vadd.f32 %v662_v31, %v456_v30 }
 0x1b8   :  { %v829_v32 = vpop.f32.mrf.mxu1 }
 0x1b9   :  { %v472_v33 = vadd.f32 %v829_v32, %v662_v31  ;;  %v487_v42 = vmax.f32 %v457_v40, 0.0 }
 0x1ba   :  { %v466_v34 = vpop.f32.mrf.mxu1 }
 0x1bb   :  { %v490_v35 = vmax.f32 %v472_v33, 0.0  ;;  %v467_v36 = vadd.f32 %v662_v31, %v466_v34 }
 0x1bd   :  { %831 = vmatpush3.xpose.msk.msra.mxu1 %vm281_vm1, %v490_v35  ;;  %v489_v38 = vmax.f32 %v467_v36, 0.0 }
 0x1be   :  { %832 = vmatprep.subr.mxu1 %v896_v14 }
 0x1c1   :  { %833 = vmatpush3.xpose.msk.msra.mxu1 %vm281_vm1, %v489_v38 }
 0x1c2   :  { %834 = vmatprep.subr.mxu1 %v896_v14 }
 0x1c5   :  { %835 = vmatpush3.xpose.msk.msra.mxu1 %vm281_vm1, %v488_v39 }
 0x1c6   :  { %836 = vmatprep.subr.mxu1 %v896_v14 }
 0x1c9   :  { %837 = vmatpush3.xpose.msk.msra.mxu1 %vm281_vm1, %v487_v42 }
 0x1ca   :  { %838 = vmatprep.subr.mxu1 %v896_v14 }
 0x1cd   :  { %839 = vmatpush3.xpose.msk.msra.mxu1 %vm281_vm1, %v486_v43 }
 0x1ce   :  { %840 = vmatprep.subr.mxu1 %v896_v14 }
 0x1d1   :  { %841 = vmatpush3.xpose.msk.msra.mxu1 %vm281_vm1, %v485_v46 }
 0x1d2   :  { %842 = vmatprep.subr.mxu1 %v896_v14 }
 0x1d5   :  { %843 = vmatpush3.xpose.msk.msra.mxu1 %vm281_vm1, %v484_v47 }
 0x1d6   :  { %844 = vmatprep.subr.mxu1 %v896_v14 }
 0x1d9   :  { %845 = vmatpush3.xpose.msk.msra.mxu1 %vm281_vm1, %v483_v50 }
 0x1da   :  { %846 = vmatprep.subr.mxu1 %v896_v14 }
 0x1dd   :  { %847 = vmatpush3.xpose.msk.msra.mxu1 %vm281_vm1, %v482_v51 }
 0x1de   :  { %848 = vmatprep.subr.mxu1 %v896_v14 }
 0x1e1   :  { %849 = vmatpush3.xpose.msk.msra.mxu1 %vm281_vm1, %v481_v54 }
 0x1e2   :  { %850 = vmatprep.subr.mxu1 %v896_v14 }
 0x1e5   :  { %851 = vmatpush3.xpose.msk.msra.mxu1 %vm281_vm1, %v480_v55 }
 0x1e6   :  { %852 = vmatprep.subr.mxu1 %v896_v14 }
 0x1e9   :  { %853 = vmatpush3.xpose.msk.msra.mxu1 %vm281_vm1, %v479_v58 }
 0x1ea   :  { %854 = vmatprep.subr.mxu1 %v896_v14 }
 0x1ed   :  { %855 = vmatpush3.xpose.msk.msra.mxu1 %vm281_vm1, %v478_v59 }
 0x1ee   :  { %856 = vmatprep.subr.mxu1 %v896_v14 }
 0x1f1   :  { %857 = vmatpush3.xpose.msk.msra.mxu1 %vm281_vm1, %v477_v62 }
 0x1f2   :  { %858 = vmatprep.subr.mxu1 %v896_v14 }
 0x1f5   :  { %859 = vmatpush3.xpose.msk.msra.mxu1 %vm281_vm1, %v476_v63 }
 0x1f6   :  { %860 = vmatprep.subr.mxu1 %v896_v14 }
 0x1f9   :  { %861 = vmatpush3.xpose.msk.msra.mxu1 %vm281_vm1, %v475_v1 }
 0x1fc   :  { %863 = vmatmul.mubr.msk.f32.vlgmr.msra.gmra.mxu1 %vm281_vm1, %v491_v2 }
 0x2bc   :  { %v609_v8 = vpop.f32.mrf.mxu1 }
 0x2bd   :  { %v623_v9 = vadd.f32 %v622_v7, %v609_v8 }
 0x2be   :  { %v864_v10 = vpop.f32.mrf.mxu1 }
 0x2bf   :  { %v696_v11 = vmul.f32 -1.442695, %v623_v9 }
 0x2c1   :  { %870 = vpow2.f32 %v696_v11 }
 0x2ce   :  { %v871_v12 = vpop.eup %870 }
 0x2cf   :  { %v627_v13 = vadd.f32 1.0, %v871_v12 }
 0x2d1   :  { %872 = vrcp.f32 %v627_v13 }
 0x2de   :  { %v873_v14 = vpop.eup %872 }
 0x2df   :  { %630 = vst [vmem:[#allocation3] sm:$0x1] %v873_v14 }
 0x2e0   :  { %885 = shalt.err (!%p882_p4)
}
 0x2e1   :  { %640 = dma.vmem_to_hbm [thread:$0]  %s638_s11, 16, %s1121_s7, [#allocation4]  }
 0x2e2   :  { %894 = dma.done.wait [#allocation4], 16  }
 0x2e3   :  { %895 = vsyncadd [#allocation4], 4294967280 }
 0x2e4   :  { %644 = vsyncpa [#allocation4], 1 }

</bundles_post_ra>
